<compile_context>
chip_gen: v5e
topology: v5e:2x2
jax: 0.10.0
libtpu: 0.0.40
codegen_flags: <defaults>
</compile_context>

<pallas_src>
import functools

import jax
import jax.numpy as jnp
from jax import lax
from jax.experimental import pallas as pl
from jax.experimental.pallas import tpu as pltpu

EPSILON = 1e-40           # nominal constant from the PyTorch module (see note)
_CLAMP_MIN = 1e-30        # TPU-safe clamp floor (f32 denormals are flushed)
_F32_TINY = 1.1754944e-38  # smallest normal f32: guards merged-log underflow
_LANE = 128
_STRIP_ROWS = 512         # in-kernel strip: 512x128 f32 = 256 KiB intermediates


def _dloss_kernel(real_ref, gen_ref, out_ref, *, label_smoothing: bool,
                  n_valid: int, tile_rows: int, strip_rows: int,
                  needs_mask: bool):
    n_strips = tile_rows // strip_rows
    tile_i = pl.program_id(0)

    def strip_partial(s, masked):
        if isinstance(s, int):
            r0 = s * strip_rows
        else:
            r0 = pl.multiple_of(s * strip_rows, strip_rows)
        lr = real_ref[pl.ds(r0, strip_rows), :].astype(jnp.float32)
        lg = gen_ref[pl.ds(r0, strip_rows), :].astype(jnp.float32)

        lr_c = jnp.clip(lr, _CLAMP_MIN, 1.0)
        lg_c = jnp.clip(1.0 - lg, _CLAMP_MIN, 1.0)
        # -log(a) - log(b) == -log(a*b): one EUP log instead of two.  Guard
        # the product against f32 underflow (both factors can sit at the
        # 1e-30 floor); only affects the already-pathological regime.
        prod = jnp.maximum(lr_c * lg_c, _F32_TINY)
        loss = -jnp.log(prod)
        if label_smoothing:
            # 0.9*(-log a) + 0.1*(-log pf) - log b == -log(a*b) + 0.1*log(a/pf)
            p_fake = jnp.clip(1.0 - lr_c, _CLAMP_MIN, 1.0)
            loss = loss + 0.1 * jnp.log(lr_c / p_fake)

        if masked:
            # Only the last grid step runs this path. n_valid < 2**38 assumed.
            row = (lax.broadcasted_iota(jnp.int32, (strip_rows, _LANE), 0)
                   + tile_i * tile_rows + r0)
            full_rows = n_valid // _LANE
            rem = n_valid % _LANE
            if rem == 0:
                valid = row < full_rows
            else:
                col = lax.broadcasted_iota(jnp.int32, (strip_rows, _LANE), 1)
                valid = (row < full_rows) | ((row == full_rows) & (col < rem))
            loss = jnp.where(valid, loss, 0.0)

        # VPU-only partial reduce: (strip,128) -> (strip//8, 8, 128) -> (8,128).
        # The cross-lane/sublane reduce is deferred to the wrapper.
        return jnp.sum(loss.reshape(strip_rows // 8, 8, _LANE), axis=0)

    def tile_partial(masked):
        if n_strips == 1:
            return strip_partial(0, masked)
        return lax.fori_loop(
            0, n_strips,
            lambda s, acc: acc + strip_partial(s, masked),
            jnp.zeros((8, _LANE), jnp.float32))

    if needs_mask:
        last = pl.num_programs(0) - 1

        @pl.when(tile_i == last)
        def _():
            out_ref[0] = tile_partial(True)

        @pl.when(tile_i != last)
        def _():
            out_ref[0] = tile_partial(False)
    else:
        out_ref[0] = tile_partial(False)


def _as_lane_rows(x):
    """Flatten to (rows, 128); free reshape when numel % 128 == 0."""
    flat = x.reshape(-1)
    pad = (-flat.shape[0]) % _LANE
    if pad:
        # TODO(synk): this pad materializes a full HBM copy for ragged
        # (numel % 128 != 0) inputs; a 1-D BlockSpec over the unpadded flat
        # array would avoid it but needs Mosaic-side 1-D block support.
        flat = jnp.pad(flat, (0, pad))
    return flat.reshape(-1, _LANE)


def _round_up(x, m):
    return ((x + m - 1) // m) * m


def _sublane_pack(dtype):
    # f32 -> 8, bf16/f16 -> 16, int8/fp8 -> 32 rows per (8,128) native tile.
    return max(8, 32 // jnp.dtype(dtype).itemsize)


@functools.lru_cache(maxsize=None)
def _tile_bytes_per_buffer():
    """Per-input, per-pipeline-buffer target bytes (generation aware)."""
    try:
        kind = jax.devices()[0].device_kind.lower()
    except Exception:
        return 2 * 1024 * 1024
    if any(v in kind for v in ("v2", "v3", "v4", "v5")):
        # 2 inputs x 2 buffers x 2 MiB = 8 MiB, under the 16 MiB scoped default.
        return 2 * 1024 * 1024
    # v6e / v7x / unknown-new: 2 x 2 x 4 MiB = 16 MiB, under 32 MiB scoped default.
    return 4 * 1024 * 1024


@functools.partial(jax.jit, static_argnames=("label_smoothing",))
def dloss(logits_real, logits_gen, label_smoothing: bool = False):
    assert logits_real.shape == logits_gen.shape
    n = logits_real.size

    real2d = _as_lane_rows(logits_real)
    gen2d = _as_lane_rows(logits_gen)
    rows = real2d.shape[0]

    itemsize = max(jnp.dtype(logits_real.dtype).itemsize,
                   jnp.dtype(logits_gen.dtype).itemsize)
    pack = max(_sublane_pack(logits_real.dtype),
               _sublane_pack(logits_gen.dtype))

    # Dtype-aware tile target (constant bytes/step), >= 2 grid steps for
    # non-trivial inputs (pipelining + v7x 2-TC split), rounded so the strip
    # count divides the tile exactly.
    target_rows = max(pack, _tile_bytes_per_buffer() // (_LANE * itemsize))
    tile_rows = min(target_rows, _round_up(pl.cdiv(rows, 2), pack))
    tile_rows = max(tile_rows, pack)
    strip_rows = min(_STRIP_ROWS, tile_rows)
    tile_rows = _round_up(tile_rows, strip_rows)

    num_tiles = pl.cdiv(rows, tile_rows)
    # Masking is only needed when lane padding or a partial last block exists,
    # and then only the final grid step pays for it.
    needs_mask = (n != rows * _LANE) or (rows % tile_rows != 0)

    kernel = functools.partial(
        _dloss_kernel,
        label_smoothing=label_smoothing,
        n_valid=n,
        tile_rows=tile_rows,
        strip_rows=strip_rows,
        needs_mask=needs_mask,
    )

    n_trans = (2 if label_smoothing else 1) * n
    cost = pl.CostEstimate(
        flops=10 * n,
        transcendentals=n_trans,
        bytes_accessed=n * (logits_real.dtype.itemsize
                            + logits_gen.dtype.itemsize)
        + num_tiles * 8 * _LANE * 4,
    )

    partials = pl.pallas_call(
        kernel,
        out_shape=jax.ShapeDtypeStruct((num_tiles, 8, _LANE), jnp.float32),
        grid=(num_tiles,),
        in_specs=[
            pl.BlockSpec((tile_rows, _LANE), lambda i: (i, 0)),
            pl.BlockSpec((tile_rows, _LANE), lambda i: (i, 0)),
        ],
        out_specs=pl.BlockSpec((1, 8, _LANE), lambda i: (i, 0, 0)),
        compiler_params=pltpu.CompilerParams(
            dimension_semantics=("parallel",)),
        cost_estimate=cost,
    )(real2d, gen2d)

    # Final (tiny) cross-lane reduce + mean over the true element count.
    return jnp.sum(partials) / n


def _dloss_ref(logits_real, logits_gen, label_smoothing: bool = False):
    # Pure-JAX reference mirroring the PyTorch module (TPU-safe clamp floor).
    lr = jnp.clip(logits_real.astype(jnp.float32), _CLAMP_MIN, 1.0)
    d_real = -jnp.log(lr)
    if label_smoothing:
        p_fake = jnp.clip(1.0 - lr, _CLAMP_MIN, 1.0)
        d_real = 0.9 * d_real + 0.1 * (-jnp.log(p_fake))
    lg = jnp.clip(1.0 - logits_gen.astype(jnp.float32), _CLAMP_MIN, 1.0)
    d_gen = -jnp.log(lg)
    return jnp.mean(d_real + d_gen)


if __name__ == "__main__":
    key = jax.random.PRNGKey(0)

    shapes = [
        (8, 128),      # single aligned tile, single strip, no mask path
        (13, 200),     # ragged: lane padding + masked last tile
        (256, 512),    # multi-tile grid, unmasked
    ]

    for shape in shapes:
        key, k1, k2 = jax.random.split(key, 3)
        logits_real = jax.random.uniform(k1, shape, jnp.float32,
                                         minval=1e-3, maxval=1.0 - 1e-3)
        logits_gen = jax.random.uniform(k2, shape, jnp.float32,
                                        minval=1e-3, maxval=1.0 - 1e-3)
        for ls in (False, True):
            out = jax.block_until_ready(
                dloss(logits_real, logits_gen, label_smoothing=ls))
            ref = jax.block_until_ready(
                _dloss_ref(logits_real, logits_gen, ls))
            assert jnp.allclose(out, ref, rtol=1e-5, atol=1e-5), \
                (shape, ls, out, ref)

    # bf16 inputs are accepted (upcast in-kernel) to halve HBM traffic.
    key, k1, k2 = jax.random.split(key, 3)
    lr16 = jax.random.uniform(k1, (64, 256), jnp.float32,
                              minval=1e-3, maxval=1.0 - 1e-3).astype(jnp.bfloat16)
    lg16 = jax.random.uniform(k2, (64, 256), jnp.float32,
                              minval=1e-3, maxval=1.0 - 1e-3).astype(jnp.bfloat16)
    out16 = jax.block_until_ready(dloss(lr16, lg16, label_smoothing=True))
    ref16 = jax.block_until_ready(_dloss_ref(lr16, lg16, True))
    assert jnp.allclose(out16, ref16, rtol=1e-5, atol=1e-5), (out16, ref16)

    print("KERNEL_OK")
</pallas_src>

<mosaic_0001>
module attributes {stable_mosaic.version = 11 : i64} {
  func.func @_dloss_kernel(%arg0: i32, %arg1: memref<8x128xf32, #tpu.memory_space<vmem>>, %arg2: memref<8x128xf32, #tpu.memory_space<vmem>>, %arg3: memref<1x8x128xf32, #tpu.memory_space<vmem>>) attributes {dimension_semantics = [#tpu.dimension_semantics<parallel>], iteration_bounds = array<i64: 1>, scalar_prefetch = 0 : i64, scratch_operands = 0 : i64, tpu.core_type = #tpu.core_type<tc>, window_params = [{transform_indices = @transform_0, window_bounds = array<i64: 8, 128>}, {transform_indices = @transform_1, window_bounds = array<i64: 8, 128>}, {transform_indices = @transform_2, window_bounds = array<i64: 1, 8, 128>}]} {
    %c0 = arith.constant 0 : index
    %c0_0 = arith.constant 0 : index
    %0 = vector.load %arg1[%c0, %c0_0] : memref<8x128xf32, #tpu.memory_space<vmem>>, vector<8x128xf32>
    %c0_1 = arith.constant 0 : index
    %c0_2 = arith.constant 0 : index
    %1 = vector.load %arg2[%c0_1, %c0_2] : memref<8x128xf32, #tpu.memory_space<vmem>>, vector<8x128xf32>
    %cst = arith.constant 1.000000e-30 : f32
    %cst_3 = arith.constant 1.000000e+00 : f32
    %2 = vector.broadcast %cst : f32 to vector<8x128xf32>
    %3 = arith.maximumf %2, %0 : vector<8x128xf32>
    %4 = vector.broadcast %cst_3 : f32 to vector<8x128xf32>
    %5 = arith.minimumf %4, %3 : vector<8x128xf32>
    %cst_4 = arith.constant 1.000000e+00 : f32
    %6 = vector.broadcast %cst_4 : f32 to vector<8x128xf32>
    %7 = arith.subf %6, %1 : vector<8x128xf32>
    %cst_5 = arith.constant 1.000000e-30 : f32
    %cst_6 = arith.constant 1.000000e+00 : f32
    %8 = vector.broadcast %cst_5 : f32 to vector<8x128xf32>
    %9 = arith.maximumf %8, %7 : vector<8x128xf32>
    %10 = vector.broadcast %cst_6 : f32 to vector<8x128xf32>
    %11 = arith.minimumf %10, %9 : vector<8x128xf32>
    %12 = arith.mulf %5, %11 : vector<8x128xf32>
    %cst_7 = arith.constant 1.17549435E-38 : f32
    %13 = vector.broadcast %cst_7 : f32 to vector<8x128xf32>
    %14 = arith.maximumf %12, %13 : vector<8x128xf32>
    %15 = math.log %14 : vector<8x128xf32>
    %cst_8 = arith.constant 0.000000e+00 : f32
    %16 = vector.broadcast %cst_8 : f32 to vector<8x128xf32>
    %17 = arith.subf %16, %15 : vector<8x128xf32>
    %18 = vector.shape_cast %17 : vector<8x128xf32> to vector<1x8x128xf32>
    %cst_9 = arith.constant dense<0.000000e+00> : vector<8x128xf32>
    %19 = vector.multi_reduction <add>, %18, %cst_9 [0] : vector<1x8x128xf32> to vector<8x128xf32>
    %c0_10 = arith.constant 0 : index
    %c0_11 = arith.constant 0 : index
    %c0_12 = arith.constant 0 : index
    %20 = vector.load %arg3[%c0_10, %c0_11, %c0_12] : memref<1x8x128xf32, #tpu.memory_space<vmem>>, vector<1x8x128xf32>
    %21 = vector.shape_cast %20 : vector<1x8x128xf32> to vector<8x128xf32>
    %22 = vector.shape_cast %19 : vector<8x128xf32> to vector<1x8x128xf32>
    tpu.vector_store %arg3[%c0_10, %c0_11, %c0_12], %22 {strides = array<i32>} : memref<1x8x128xf32, #tpu.memory_space<vmem>>, vector<1x8x128xf32>,
    return
  }
  func.func @transform_0(%arg0: i32) -> (i32, i32) {
    %c0_i32 = arith.constant 0 : i32
    %c0_i32_0 = arith.constant 0 : i32
    return %arg0, %c0_i32 : i32, i32
  }
  func.func @transform_1(%arg0: i32) -> (i32, i32) {
    %c0_i32 = arith.constant 0 : i32
    %c0_i32_0 = arith.constant 0 : i32
    return %arg0, %c0_i32 : i32, i32
  }
  func.func @transform_2(%arg0: i32) -> (i32, i32, i32) {
    %c0_i32 = arith.constant 0 : i32
    %c0_i32_0 = arith.constant 0 : i32
    %c0_i32_1 = arith.constant 0 : i32
    return %arg0, %c0_i32, %c0_i32_0 : i32, i32, i32
  }
}

</mosaic_0001>

<bundles_post_ra>
// kernel: dloss.1
= control target key start
LH: loop header
LB: loop body
LE: loop exit
PB: predicated region body
PF: predicated region fallthrough
CT: control target
= control target key end

     0   :  { %7 = vsyncpa [#allocation3], 0  ;;  %s141_s0 = inlined_call_operand.hbm [shape: f32[8,128], index: 0, kind: input, shape index: {}]   ;;  %s142_s1 = inlined_call_operand.hbm [shape: f32[8,128], index: 1, kind: input, shape index: {}]   ;;  %s143_s2 = inlined_call_operand.vmem [shape: f32[1,8,128], index: 2, kind: output, shape index: {}]  }
   0x1   :  { %s14_s11 = sshll.u32 %s141_s0, 4  ;;  %s15_s11 = int_to_ptr.hbm [resolvable:$true] %s14_s11 }
   0x2   :  { %8 = vsyncpa [#allocation5], 0  ;;  %s115_s12 = smov [#allocation2]   ;;  %s25_s16 = sshll.u32 %s142_s1, 4  ;;  %s26_s16 = int_to_ptr.hbm [resolvable:$true] %s25_s16 }
   0x3   :  { %s16_s13 = sshll.u32 %s115_s12, 4  ;;  %s116_s17 = smov [#allocation4]   ;;  %s17_s13 = int_to_ptr.vmem [resolvable:$true] %s16_s13 }
   0x4   :  { %19 = dma.hbm_to_vmem [thread:$0]  %s15_s11, 128, %s17_s13, [#allocation3]  }
   0x5   :  { %s27_s18 = sshll.u32 %s116_s17, 4  ;;  %s28_s18 = int_to_ptr.vmem [resolvable:$true] %s27_s18 }
   0x6   :  { %30 = dma.hbm_to_vmem [thread:$0]  %s26_s16, 128, %s28_s18, [#allocation5]  }
   0x7   :  { %111 = dma.done.wait [#allocation3], 128  }
   0x8   :  { %112 = vsyncadd [#allocation3], 4294967168 }
   0x9   :  { %113 = dma.done.wait [#allocation5], 128  }
   0xa   :  { %114 = vsyncadd [#allocation5], 4294967168  ;;  %v39_v0 = vld [vmem:[#allocation2] sm:$0xff]  ;;  %v40_v1 = vld [vmem:[#allocation4] sm:$0xff] }
   0xb   :  { %v41_v2 = vmax.f32 %v39_v0, 1e-30  ;;  %v43_v3 = vsub.f32 1.0, %v40_v1 }
   0xd   :  { %v42_v4 = vmin.f32 %v41_v2, 1.0  ;;  %v44_v5 = vmax.f32 %v43_v3, 1e-30 }
   0xf   :  { %v45_v6 = vmin.f32 %v44_v5, 1.0 }
  0x11   :  { %v46_v7 = vmul.f32 %v45_v6, %v42_v4 }
  0x13   :  { %v47_v8 = vmax.f32 %v46_v7, 1.1754944e-38 }
  0x15   :  { %61 = vlog2.f32 %v47_v8 }
  0x1b   :  { %v62_v9 = vpop.eup %61 }
  0x1c   :  { %v49_v10 = vmul.f32 0.6931472, %v62_v9 }
  0x1e   :  { %v50_v11 = vsub.f32 0.0, %v49_v10 }
  0x20   :  { %52 = vst [vmem:[%s143_s2] sm:$0xff] %v50_v11 }
  0x21   :  { %57 = vsyncpa [#allocation3], 1 }
  0x22   :  { %58 = vsyncpa [#allocation5], 1 }

</bundles_post_ra>
